<compile_context>
chip_gen: v6e
topology: v6e:2x2x1
jax: 0.10.0
libtpu: 0.0.40
codegen_flags: <defaults>
</compile_context>

<pallas_src>
import numpy as np
import jax
import jax.numpy as jnp
from jax import lax
from jax.experimental import pallas as pl
from jax.experimental.pallas import tpu as pltpu

_LANE = 128


def _filter_monitor_kernel(scores_ref, seg_ref, filt_ref, acc_ref):
    # scores_ref: [S, TN]   (N on lanes, S on sublanes)
    # seg_ref:    [2, S, TN] (segment lo / hi stacked on the leading axis)
    # filt_ref:   [2, TN]    (filter lo / hi)
    # acc_ref:    [1, TN]
    scores = scores_ref[...]                                    # [S, TN]

    # First-match argmax along the segment (sublane) axis — torch.argmax
    # semantics, expressed via max + min-of-iota (robust cross-sublane lowering).
    # NOTE: max and compare are done in the SAME dtype as `scores` on purpose.
    mx = jnp.max(scores, axis=0, keepdims=True)                 # [1, TN]
    idx = lax.broadcasted_iota(jnp.int32, scores.shape, 0)      # [S, TN]
    big = jnp.int32(2 ** 30)
    first_idx = jnp.min(jnp.where(scores == mx, idx, big),
                        axis=0, keepdims=True)                  # [1, TN]
    sel = (idx == first_idx).astype(jnp.float32)                # one-hot [S, TN]

    # middle_seg = (segment_boundaries[argmax][0] + segment_boundaries[argmax][1]) / 2
    seg = seg_ref[...]                                          # [2, S, TN]
    mid = (seg[0] + seg[1]) * 0.5                               # [S, TN]
    middle_seg = jnp.sum(sel * mid, axis=0, keepdims=True)      # [1, TN]

    # acc = middle_seg >= filter_lo and middle_seg <= filter_hi
    filt = filt_ref[...]                                        # [2, TN]
    hit = jnp.logical_and(middle_seg >= filt[0:1, :],
                          middle_seg <= filt[1:2, :])
    acc_ref[...] = hit.astype(jnp.float32)                      # lane-dense store


def filter_monitor_batched(scores, seg_bounds, filt_bounds, *, max_tile=2048):
    """scores: [N, S]; seg_bounds: [N, S, 2]; filt_bounds: [N, 2] -> acc [N] f32."""
    N, S = scores.shape
    dt = jnp.float32
    # TODO(synk): if upstream tensors are bf16, they could be kept bf16 here to
    # halve HBM traffic; the demo inputs are f32 so we keep exact-f32 parity.

    # Transposed, lane-dense layout: N on lanes, S on sublanes.  The seg
    # boundaries stay as ONE stacked array (single transpose, no strided
    # host-side slices into two [N, S] copies).
    scores_t = jnp.transpose(scores.astype(dt))                 # [S, N]
    seg_t = jnp.transpose(seg_bounds.astype(dt), (2, 1, 0))     # [2, S, N]
    filt_t = jnp.transpose(filt_bounds.astype(dt))              # [2, N]

    # Lane-align N, then pick a tile width TN (multiple of 128) whose
    # double-buffered footprint stays well under the smallest scoped-VMEM
    # default (16 MiB on v5e; v7x only has 64 MiB physical VMEM).
    Np = max(_LANE, ((N + _LANE - 1) // _LANE) * _LANE)
    vmem_budget = 8 * 1024 * 1024
    bytes_per_col = (3 * S + 3) * 4 * 2          # (scores + 2*seg + filt + out), x2 buffers
    tile_cap = max(_LANE, (vmem_budget // bytes_per_col) // _LANE * _LANE)
    TN = min(max_tile, tile_cap, Np)
    num_tiles = pl.cdiv(Np, TN)
    Np = num_tiles * TN

    pad = Np - N
    if pad:
        scores_t = jnp.pad(scores_t, ((0, 0), (0, pad)))
        seg_t = jnp.pad(seg_t, ((0, 0), (0, 0), (0, pad)))
        filt_t = jnp.pad(filt_t, ((0, 0), (0, pad)))

    acc = pl.pallas_call(
        _filter_monitor_kernel,
        out_shape=jax.ShapeDtypeStruct((1, Np), jnp.float32),
        grid=(num_tiles,),
        in_specs=[
            pl.BlockSpec((S, TN), lambda j: (0, j)),
            pl.BlockSpec((2, S, TN), lambda j: (0, 0, j)),
            pl.BlockSpec((2, TN), lambda j: (0, j)),
        ],
        out_specs=pl.BlockSpec((1, TN), lambda j: (0, j)),
        compiler_params=pltpu.CompilerParams(
            dimension_semantics=("parallel",)),
    )(scores_t, seg_t, filt_t)

    return acc[0, :N]                                           # [N]


def intermediate_filter_monitor(program_qsseq, program_raw, buffers,
                                segment_boundaries, filter_boundaries):
    """Host-side reproduction of IntermediateFilterMonitor.forward.

    The per-filter compute is batched into a single Pallas kernel; the
    dict-of-(acc, 1) bookkeeping is plain Python (data-dependent control flow
    over program structure, not tensor compute).
    """
    scores_list, seg_list, filt_list, keys = [], [], [], []
    for i, prog in enumerate(program_qsseq):
        filter_num = 0
        for block_id, block in enumerate(prog):
            if block['op'] == 'filter':
                scores_list.append(buffers[i][block_id])
                seg_list.append(segment_boundaries[i])
                filt_list.append(filter_boundaries[i][filter_num])
                keys.append(program_raw[i][block_id]['function'])
                filter_num += 1

    monitors, outputs = {}, {}
    if not scores_list:
        return monitors, outputs

    scores = jnp.stack(scores_list)          # [N, S]
    seg_bounds = jnp.stack(seg_list)         # [N, S, 2]
    filt_bounds = jnp.stack(filt_list)       # [N, 2]

    acc = filter_monitor_batched(scores, seg_bounds, filt_bounds)   # [N]
    # Single device->host transfer, then a pure-numpy loop (no per-element syncs).
    hits = np.asarray(jax.device_get(acc)) > 0.5

    for n, key in enumerate(keys):
        monitors.setdefault(key, []).append((bool(hits[n]), 1))
    # TODO(synk): `outputs` is always empty in the reference module; kept as {}.
    return monitors, outputs


if __name__ == "__main__":
    key = jax.random.PRNGKey(0)
    num_programs = 2
    S = 8  # number of segments per example

    # Synthetic programs: each program has 4 blocks, two of which are 'filter'.
    program_qsseq = [
        [{'op': 'scene'}, {'op': 'filter'}, {'op': 'relate'}, {'op': 'filter'}]
        for _ in range(num_programs)
    ]
    program_raw = [
        [{'function': 'scene'}, {'function': 'filter_color'},
         {'function': 'relate'}, {'function': 'filter_shape'}]
        for _ in range(num_programs)
    ]

    # buffers[i][block_id]: intermediate attention over S segments.
    k1, k2 = jax.random.split(key, 2)
    buf_arr = jax.random.normal(k1, (num_programs, 4, S), dtype=jnp.float32)
    buffers = [[buf_arr[i, b] for b in range(4)] for i in range(num_programs)]

    # segment_boundaries[i]: [S, 2] with lo < hi, monotone segments over [0, 1].
    seg_starts = jnp.linspace(0.0, 1.0, S + 1)
    seg_b = jnp.stack([seg_starts[:-1], seg_starts[1:]], axis=-1)   # [S, 2]
    seg_b = jnp.broadcast_to(seg_b, (num_programs, S, 2))
    segment_boundaries = [seg_b[i] for i in range(num_programs)]

    # filter_boundaries[i]: [num_filters_per_prog=2, 2] intervals within [0, 1].
    fb = jax.random.uniform(k2, (num_programs, 2, 2), dtype=jnp.float32)
    fb = jnp.sort(fb, axis=-1)  # ensure lo <= hi
    filter_boundaries = [fb[i] for i in range(num_programs)]

    # --- Run the kernel once directly and block on the result. ---
    scores_all = jnp.stack([buf_arr[i, b] for i in range(num_programs) for b in (1, 3)])
    seg_all = jnp.stack([seg_b[i] for i in range(num_programs) for _ in (1, 3)])
    filt_all = jnp.stack([fb[i, f] for i in range(num_programs) for f in (0, 1)])
    acc = jax.block_until_ready(
        filter_monitor_batched(scores_all, seg_all, filt_all))      # [N]

    # Pure-numpy reference check (first-match argmax semantics).
    sc_np = np.asarray(scores_all)
    seg_np = np.asarray(seg_all)
    flt_np = np.asarray(filt_all)
    am = sc_np.argmax(axis=-1)
    mid_ref = (seg_np[np.arange(sc_np.shape[0]), am, 0] +
               seg_np[np.arange(sc_np.shape[0]), am, 1]) / 2.0
    acc_ref = ((mid_ref >= flt_np[:, 0]) & (mid_ref <= flt_np[:, 1])).astype(np.float32)
    np.testing.assert_allclose(np.asarray(acc), acc_ref, atol=0.0)

    # --- Full module-equivalent flow. ---
    monitors, outputs = intermediate_filter_monitor(
        program_qsseq, program_raw, buffers, segment_boundaries, filter_boundaries)

    assert set(monitors.keys()) == {'filter_color', 'filter_shape'}
    assert all(len(v) == num_programs for v in monitors.values())
    print("KERNEL_OK")
</pallas_src>

<mosaic_0001>
module attributes {stable_mosaic.version = 11 : i64} {
  func.func @_filter_monitor_kernel(%arg0: i32, %arg1: memref<8x128xf32, #tpu.memory_space<vmem>>, %arg2: memref<2x8x128xf32, #tpu.memory_space<vmem>>, %arg3: memref<2x128xf32, #tpu.memory_space<vmem>>, %arg4: memref<1x128xf32, #tpu.memory_space<vmem>>) attributes {dimension_semantics = [#tpu.dimension_semantics<parallel>], iteration_bounds = array<i64: 1>, scalar_prefetch = 0 : i64, scratch_operands = 0 : i64, tpu.core_type = #tpu.core_type<tc>, window_params = [{transform_indices = @transform_0, window_bounds = array<i64: 8, 128>}, {transform_indices = @transform_1, window_bounds = array<i64: 2, 8, 128>}, {transform_indices = @transform_2, window_bounds = array<i64: 2, 128>}, {transform_indices = @transform_3, window_bounds = array<i64: 1, 128>}]} {
    %c0 = arith.constant 0 : index
    %c0_0 = arith.constant 0 : index
    %0 = vector.load %arg1[%c0, %c0_0] : memref<8x128xf32, #tpu.memory_space<vmem>>, vector<8x128xf32>
    %cst = arith.constant dense<0xFF800000> : vector<128xf32>
    %1 = vector.multi_reduction <maximumf>, %0, %cst [0] : vector<8x128xf32> to vector<128xf32>
    %2 = vector.shape_cast %1 : vector<128xf32> to vector<1x128xf32>
    %3 = tpu.iota {dimensions = array<i32: 0>} : vector<8x128xi32>
    %4 = vector.broadcast %2 : vector<1x128xf32> to vector<8x128xf32>
    %5 = arith.cmpf oeq, %0, %4 : vector<8x128xf32>
    %c1073741824_i32 = arith.constant 1073741824 : i32
    %6 = vector.broadcast %c1073741824_i32 : i32 to vector<8x128xi32>
    %7 = arith.select %5, %3, %6 : vector<8x128xi1>, vector<8x128xi32>
    %cst_1 = arith.constant dense<2147483647> : vector<128xi32>
    %8 = vector.multi_reduction <minsi>, %7, %cst_1 [0] : vector<8x128xi32> to vector<128xi32>
    %9 = vector.shape_cast %8 : vector<128xi32> to vector<1x128xi32>
    %10 = vector.broadcast %9 : vector<1x128xi32> to vector<8x128xi32>
    %11 = arith.cmpi eq, %3, %10 : vector<8x128xi32>
    %12 = arith.extui %11 : vector<8x128xi1> to vector<8x128xi32>
    %13 = arith.sitofp %12 : vector<8x128xi32> to vector<8x128xf32>
    %c0_2 = arith.constant 0 : index
    %c0_3 = arith.constant 0 : index
    %c0_4 = arith.constant 0 : index
    %14 = vector.load %arg2[%c0_2, %c0_3, %c0_4] : memref<2x8x128xf32, #tpu.memory_space<vmem>>, vector<2x8x128xf32>
    %15 = vector.extract_strided_slice %14 {offsets = [0, 0, 0], sizes = [1, 8, 128], strides = [1, 1, 1]} : vector<2x8x128xf32> to vector<1x8x128xf32>
    %16 = vector.shape_cast %15 : vector<1x8x128xf32> to vector<8x128xf32>
    %17 = vector.extract_strided_slice %14 {offsets = [1, 0, 0], sizes = [1, 8, 128], strides = [1, 1, 1]} : vector<2x8x128xf32> to vector<1x8x128xf32>
    %18 = vector.shape_cast %17 : vector<1x8x128xf32> to vector<8x128xf32>
    %19 = arith.addf %16, %18 : vector<8x128xf32>
    %cst_5 = arith.constant 5.000000e-01 : f32
    %20 = vector.broadcast %cst_5 : f32 to vector<8x128xf32>
    %21 = arith.mulf %19, %20 : vector<8x128xf32>
    %22 = arith.mulf %13, %21 : vector<8x128xf32>
    %cst_6 = arith.constant dense<0.000000e+00> : vector<128xf32>
    %23 = vector.multi_reduction <add>, %22, %cst_6 [0] : vector<8x128xf32> to vector<128xf32>
    %24 = vector.shape_cast %23 : vector<128xf32> to vector<1x128xf32>
    %c0_7 = arith.constant 0 : index
    %c0_8 = arith.constant 0 : index
    %25 = vector.load %arg3[%c0_7, %c0_8] : memref<2x128xf32, #tpu.memory_space<vmem>>, vector<2x128xf32>
    %26 = vector.extract_strided_slice %25 {offsets = [0, 0], sizes = [1, 128], strides = [1, 1]} : vector<2x128xf32> to vector<1x128xf32>
    %27 = arith.cmpf oge, %24, %26 : vector<1x128xf32>
    %28 = vector.extract_strided_slice %25 {offsets = [1, 0], sizes = [1, 128], strides = [1, 1]} : vector<2x128xf32> to vector<1x128xf32>
    %29 = arith.cmpf ole, %24, %28 : vector<1x128xf32>
    %30 = arith.andi %27, %29 : vector<1x128xi1>
    %31 = arith.extui %30 : vector<1x128xi1> to vector<1x128xi32>
    %32 = arith.sitofp %31 : vector<1x128xi32> to vector<1x128xf32>
    %c0_9 = arith.constant 0 : index
    %c0_10 = arith.constant 0 : index
    %33 = vector.load %arg4[%c0_9, %c0_10] : memref<1x128xf32, #tpu.memory_space<vmem>>, vector<1x128xf32>
    tpu.vector_store %arg4[%c0_9, %c0_10], %32 {strides = array<i32>} : memref<1x128xf32, #tpu.memory_space<vmem>>, vector<1x128xf32>,
    return
  }
  func.func @transform_0(%arg0: i32) -> (i32, i32) {
    %c0_i32 = arith.constant 0 : i32
    %c0_i32_0 = arith.constant 0 : i32
    return %c0_i32, %arg0 : i32, i32
  }
  func.func @transform_1(%arg0: i32) -> (i32, i32, i32) {
    %c0_i32 = arith.constant 0 : i32
    %c0_i32_0 = arith.constant 0 : i32
    %c0_i32_1 = arith.constant 0 : i32
    return %c0_i32, %c0_i32_0, %arg0 : i32, i32, i32
  }
  func.func @transform_2(%arg0: i32) -> (i32, i32) {
    %c0_i32 = arith.constant 0 : i32
    %c0_i32_0 = arith.constant 0 : i32
    return %c0_i32, %arg0 : i32, i32
  }
  func.func @transform_3(%arg0: i32) -> (i32, i32) {
    %c0_i32 = arith.constant 0 : i32
    %c0_i32_0 = arith.constant 0 : i32
    return %c0_i32, %arg0 : i32, i32
  }
}

</mosaic_0001>

<bundles_post_ra>
// kernel: tpu_custom_call.1
= control target key start
LH: loop header
LB: loop body
LE: loop exit
PB: predicated region body
PF: predicated region fallthrough
CT: control target
= control target key end

     0   :  { %8 = vsyncpa [#allocation3], 0  ;;  %s215_s0 = inlined_call_operand.hbm [shape: f32[8,128], index: 0, kind: input, shape index: {}]   ;;  %s216_s1 = inlined_call_operand.hbm [shape: f32[2,8,128], index: 1, kind: input, shape index: {}]   ;;  %s217_s2 = inlined_call_operand.vmem [shape: f32[2,128], index: 2, kind: input, shape index: {}]   ;;  %s218_s3 = inlined_call_operand.hbm [shape: f32[1,128], index: 3, kind: output, shape index: {}]  }
   0x1   :  { %9 = vsyncpa [#allocation6], 0 }
   0x2   :  { %10 = vsyncpa [#allocation4], 0  ;;  %s176_s12 = smov [#allocation2]   ;;  %s177_s14 = smov [#allocation5]  }
   0x3   :  { %s17_s13 = sshll.u32 %s176_s12, 4  ;;  %s26_s15 = sshll.u32 %s177_s14, 4  ;;  %s18_s13 = int_to_ptr.vmem [resolvable:$true] %s17_s13  ;;  %s27_s15 = int_to_ptr.vmem [resolvable:$true] %s26_s15 }
   0x4   :  { %s118_s16 = scalar_lea.vmem %s18_s13, 128  ;;  %p123_p1 = scmp.lt.s32.totalorder %s18_s13, %s18_s13 }
   0x5   :  { %p119_p0 = scmp.ne.s32.totalorder %s18_s13, %s118_s16  ;;  %p124_p2 = scmp.lt.s32.totalorder %s118_s16, %s118_s16 }
   0x7   :  { %p125_p3 = por %p124_p2, %p123_p1 }
   0x9   :  { %p126_p4 = pnand %p125_p3, %p119_p0 }
   0xb   :  { %129 = shalt.err (!%p126_p4)
}
   0xc   :  { %20 = dma.hbm_to_vmem [thread:$0]  %s215_s0, 128, %s18_s13, [#allocation3]  }
   0xd   :  { %s138_s19 = scalar_lea.vmem %s27_s15, 256  ;;  %p143_p6 = scmp.lt.s32.totalorder %s27_s15, %s27_s15 }
   0xe   :  { %p139_p5 = scmp.ne.s32.totalorder %s27_s15, %s138_s19  ;;  %p144_p7 = scmp.lt.s32.totalorder %s138_s19, %s138_s19 }
  0x10   :  { %p145_p8 = por %p144_p7, %p143_p6 }
  0x12   :  { %p146_p9 = pnand %p145_p8, %p139_p5 }
  0x14   :  { %149 = shalt.err (!%p146_p9)
}
  0x15   :  { %s178_s20 = smov 128   ;;  %s179_s21 = smov 8  }
  0x16   :  { %32 = dma.hbm_to_vmem [thread:$0]  %s216_s1, 256, %s27_s15, [#allocation6], %s178_s20, %s178_s20, %s179_s21  }
  0x17   :  { %170 = dma.done.wait [#allocation3], 128  }
  0x18   :  { %171 = vsyncadd [#allocation3], 4294967168 }
  0x19   :  { %172 = dma.done.wait [#allocation6], 256  }
  0x1a   :  { %173 = vsyncadd [#allocation6], 4294967040  ;;  %v41_v0 = vld [vmem:[#allocation2] sm:$0xff]  ;;  %v48_v4 = vlaneseq  ;;  %v64_v12 = vld [vmem:[#allocation5] sm:$0xff]  ;;  %v180_v20 = vmov 0.0   ;;  %v181_v30 = vmov 0  }
  0x1b   :  { %v42_v1 = vrot.slane %v41_v0, 4  ;;  %v65_v13 = vld [vmem:[#allocation5 + $0x8] sm:$0xff]  ;;  %v75_v28 = vld [vmem:[%s217_s2] sm:$0x3]  ;;  %s182_s24 = smov [#allocation7]  }
  0x1c   :  { %v49_v7 = vshrl.u32 %v48_v4, 7  ;;  %v66_v15 = vadd.f32 %v65_v13, %v64_v12  ;;  %s91_s25 = sshll.u32 %s182_s24, 4  ;;  %s92_s25 = int_to_ptr.vmem [resolvable:$true] %s91_s25 }
  0x1d   :  { %v43_v2 = vmax.f32 %v41_v0, %v42_v1  ;;  %s150_s26 = scalar_lea.vmem %s92_s25, 16  ;;  %s154_s27 = scalar_lea.vmem %s92_s25, 32 }
  0x1e   :  { %v67_v18 = vmul.f32 0.5, %v66_v15  ;;  %p151_p10 = scmp.ne.s32.totalorder %s92_s25, %s150_s26  ;;  %p155_p11 = scmp.lt.s32.totalorder %s92_s25, %s92_s25 }
  0x1f   :  { %v44_v3 = vrot.slane %v43_v2, 2  ;;  %p156_p12 = scmp.lt.s32.totalorder %s154_s27, %s150_s26 }
  0x21   :  { %v45_v5 = vmax.f32 %v43_v2, %v44_v3  ;;  %p157_p13 = por %p156_p12, %p155_p11 }
  0x23   :  { %v46_v6 = vrot.slane %v45_v5, 1  ;;  %p158_p0 = pnand %p157_p13, %p151_p10 }
  0x25   :  { %v47_v8 = vmax.f32 %v45_v5, %v46_v6 }
  0x27   :  { %vm50_vm0 = vcmp.eq.f32.partialorder %v41_v0, %v47_v8 }
  0x28   :  { %v51_v9 = vsel %vm50_vm0, %v49_v7, 1073741824 }
  0x29   :  { %v52_v10 = vrot.slane %v51_v9, 4 }
  0x2b   :  { %vm53_vm1 = vcmp.lt.s32.totalorder %v51_v9, %v52_v10 }
  0x2c   :  { %v54_v11 = vsel %vm53_vm1, %v51_v9, %v52_v10 }
  0x2d   :  { %v55_v14 = vrot.slane %v54_v11, 2 }
  0x2f   :  { %vm56_vm2 = vcmp.lt.s32.totalorder %v54_v11, %v55_v14 }
  0x30   :  { %v57_v16 = vsel %vm56_vm2, %v54_v11, %v55_v14 }
  0x31   :  { %v58_v17 = vrot.slane %v57_v16, 1 }
  0x33   :  { %vm59_vm3 = vcmp.lt.s32.totalorder %v57_v16, %v58_v17 }
  0x34   :  { %v60_v19 = vsel %vm59_vm3, %v57_v16, %v58_v17 }
  0x35   :  { %vm61_vm4 = vcmp.eq.s32.totalorder %v49_v7, %v60_v19 }
  0x36   :  { %v101_v21 = vsel %vm61_vm4, 1.0, %v180_v20 }
  0x37   :  { %v68_v22 = vmul.f32 %v101_v21, %v67_v18 }
  0x39   :  { %v69_v23 = vrot.slane %v68_v22, 4 }
  0x3b   :  { %v70_v24 = vadd.f32 %v69_v23, %v68_v22 }
  0x3d   :  { %v71_v25 = vrot.slane %v70_v24, 2 }
  0x3f   :  { %v72_v26 = vadd.f32 %v71_v25, %v70_v24 }
  0x41   :  { %v73_v27 = vrot.slane %v72_v26, 1 }
  0x43   :  { %v74_v29 = vadd.f32 %v73_v27, %v72_v26 }
  0x45   :  { %vm77_vm5 = vcmp.le.f32.partialorder %v74_v29, %v75_v28  ;;  %vm76_vm6 = vcmp.ge.f32.partialorder %v74_v29, %v75_v28 }
  0x46   :  { %v78_v31 = vsel %vm77_vm5, 1, %v181_v30 }
  0x47   :  { %v79_v32 = vrot.slane %v78_v31, 1 }
  0x49   :  { %vm80_vm7 = vcmp.ne.s32.totalorder %v79_v32, 0 }
  0x4a   :  { %vm81_vm8 = vmand %vm76_vm6, %vm80_vm7 }
  0x4b   :  { %v102_v33 = vsel %vm81_vm8, 1.0, %v180_v20 }
  0x4c   :  { %84 = vst [vmem:[#allocation7] sm:$0x1] %v102_v33 }
  0x4d   :  { %161 = shalt.err (!%p158_p0)
}
  0x4e   :  { %94 = dma.vmem_to_hbm [thread:$0]  %s92_s25, 16, %s218_s3, [#allocation4]  }
  0x4f   :  { %174 = dma.done.wait [#allocation4], 16  }
  0x50   :  { %175 = vsyncadd [#allocation4], 4294967280 }
  0x51   :  { %98 = vsyncpa [#allocation3], 1 }
  0x52   :  { %99 = vsyncpa [#allocation6], 1 }
  0x53   :  { %100 = vsyncpa [#allocation4], 1 }

</bundles_post_ra>
